<compile_context>
chip_gen: v7x
topology: tpu7x:2x2x1
jax: 0.10.0
libtpu: 0.0.40
codegen_flags: <defaults>
</compile_context>

<pallas_src>
import functools

import jax
import jax.numpy as jnp
from jax.experimental import pallas as pl
from jax.experimental.pallas import tpu as pltpu


def _round_up(x, m):
    return ((x + m - 1) // m) * m


def _cmlp_kernel(u_ref, w0_ref, b0_ref, w1_ref, b1_ref, w2_ref, b2_ref, o_ref):
    # u_ref : (TILE_M, K0)      shared im2col tile (block index constant across groups)
    # w0_ref: (1, K0,   G*H0)   contraction-major, stacked per-series columns
    # w1_ref: (1, G*H0, G*H1)   block-diagonal
    # w2_ref: (1, G*H1, G)      block-diagonal (one output column per series)
    # b*_ref: (1, 1, ...)
    # o_ref : (1, TILE_M, G)    lane-dense output slab for this group of series
    u = u_ref[...]

    # layer 0: Conv1d(num_series, H0, lag) over im2col == (TILE_M,K0) x (K0,G*H0)
    h = jnp.dot(u, w0_ref[0], preferred_element_type=jnp.float32) + b0_ref[0]
    h = jnp.maximum(h, 0.0)
    # layer 1: Conv1d(H0, H1, 1)  == block-diagonal (G*H0, G*H1) matmul
    h = jnp.dot(h.astype(w1_ref.dtype), w1_ref[0],
                preferred_element_type=jnp.float32) + b1_ref[0]
    h = jnp.maximum(h, 0.0)
    # layer 2: Conv1d(H1, 1, 1)   == block-diagonal (G*H1, G) matmul
    out = jnp.dot(h.astype(w2_ref.dtype), w2_ref[0],
                  preferred_element_type=jnp.float32) + b2_ref[0]    # (TILE_M, G)

    o_ref[0] = out.astype(o_ref.dtype)


def _build_grouped_params(params, p, lag, group_size, compute_dtype):
    """Pre-transpose + stack per-series weights into grouped block-diagonal form."""
    W0, b0, W1, b1, W2, b2 = params
    H0 = W0.shape[1]
    H1 = W1.shape[1]
    K0 = p * lag

    if group_size is None:
        # Aim for ~128 lanes in the hidden dimension of each group.
        group_size = max(1, min(p, -(-128 // H0)))
    G = group_size
    n_groups = -(-p // G)
    p_pad = n_groups * G

    def pad_series(a):
        if p_pad == p:
            return a
        return jnp.pad(a, ((0, p_pad - p),) + ((0, 0),) * (a.ndim - 1))

    W0p, b0p = pad_series(W0), pad_series(b0)
    W1p, b1p = pad_series(W1), pad_series(b1)
    W2p, b2p = pad_series(W2), pad_series(b2)

    # layer 0: (p, H0, K0) -> (n_groups, K0, G*H0); column block g = W0[series].T
    W0g = jnp.transpose(W0p, (0, 2, 1)).reshape(n_groups, G, K0, H0)
    W0g = jnp.transpose(W0g, (0, 2, 1, 3)).reshape(n_groups, K0, G * H0)
    b0g = b0p.reshape(n_groups, 1, G * H0)

    eye = jnp.eye(G, dtype=W1p.dtype)
    # layer 1: block-diagonal (G*H0, G*H1); block (g, g) = W1[series].T
    W1t = jnp.transpose(W1p, (0, 2, 1)).reshape(n_groups, G, H0, H1)
    W1g = jnp.einsum('ngab,gh->ngahb', W1t, eye).reshape(n_groups, G * H0, G * H1)
    b1g = b1p.reshape(n_groups, 1, G * H1)

    # layer 2: block-diagonal (G*H1, G); column g = W2[series].T
    W2t = W2p.reshape(n_groups, G, H1)
    W2g = jnp.einsum('ngh,gj->nghj', W2t, eye).reshape(n_groups, G * H1, G)
    b2g = b2p.reshape(n_groups, 1, G)

    cast = lambda a: a.astype(compute_dtype)
    grouped = (cast(W0g), cast(b0g), cast(W1g), cast(b1g), cast(W2g), cast(b2g))
    return grouped, G, n_groups


def cmlp_forward(X, params, lag, *, tile_m=1024, group_size=None,
                 compute_dtype=jnp.float32):
    """X: (batch, T, p). Returns (batch, T - lag + 1, p)."""
    batch, T, p = X.shape
    T_out = T - lag + 1
    M = batch * T_out
    K0 = p * lag
    H0 = params[0].shape[1]
    H1 = params[2].shape[1]

    grouped, G, n_groups = _build_grouped_params(params, p, lag, group_size,
                                                 compute_dtype)
    W0g, b0g, W1g, b1g, W2g, b2g = grouped
    GH0, GH1 = G * H0, G * H1

    # im2col: U[b*T_out + t, c*lag + k] = X[b, t + k, c] (matches Conv1d weight
    # flattening (out_ch, in_ch, lag) -> (out_ch, in_ch*lag)).
    # TODO(synk): for large lag, build this tile inside the kernel from an X
    # block (strided pl.ds reads) instead of materializing a lag-expanded copy in HBM.
    idx = jnp.arange(T_out)[:, None] + jnp.arange(lag)[None, :]   # (T_out, lag)
    windows = X[:, idx, :]                                        # (b, T_out, lag, p)
    U = jnp.transpose(windows, (0, 1, 3, 2)).reshape(M, K0).astype(compute_dtype)

    # Tile M (multiple of 8); pad rows with zeros (discarded after the call).
    tile_m = min(tile_m, _round_up(M, 8))
    M_pad = _round_up(M, tile_m)
    if M_pad != M:
        U = jnp.pad(U, ((0, M_pad - M), (0, 0)))
    n_m = M_pad // tile_m

    itemsize = jnp.dtype(compute_dtype).itemsize
    flops = 2 * M_pad * n_groups * (K0 * GH0 + GH0 * GH1 + GH1 * G)
    bytes_accessed = (
        M_pad * K0 * itemsize
        + n_m * sum(a.size for a in (W0g, b0g, W1g, b1g, W2g, b2g)) * itemsize
        + n_groups * M_pad * G * 4)

    kernel = pl.pallas_call(
        _cmlp_kernel,
        out_shape=jax.ShapeDtypeStruct((n_groups, M_pad, G), jnp.float32),
        grid_spec=pltpu.PrefetchScalarGridSpec(
            num_scalar_prefetch=0,
            # Group axis innermost: U's block index is constant across it, so the
            # big U tile stays resident and only tiny weight blocks are re-fetched.
            grid=(n_m, n_groups),
            in_specs=[
                pl.BlockSpec((tile_m, K0), lambda mi, gi: (mi, 0)),     # U tile
                pl.BlockSpec((1, K0, GH0), lambda mi, gi: (gi, 0, 0)),  # W0 group
                pl.BlockSpec((1, 1, GH0), lambda mi, gi: (gi, 0, 0)),   # b0 group
                pl.BlockSpec((1, GH0, GH1), lambda mi, gi: (gi, 0, 0)), # W1 group
                pl.BlockSpec((1, 1, GH1), lambda mi, gi: (gi, 0, 0)),   # b1 group
                pl.BlockSpec((1, GH1, G), lambda mi, gi: (gi, 0, 0)),   # W2 group
                pl.BlockSpec((1, 1, G), lambda mi, gi: (gi, 0, 0)),     # b2 group
            ],
            out_specs=pl.BlockSpec((1, tile_m, G), lambda mi, gi: (gi, mi, 0)),
        ),
        compiler_params=pltpu.CompilerParams(
            dimension_semantics=("parallel", "parallel")),
        cost_estimate=pl.CostEstimate(flops=flops, transcendentals=0,
                                      bytes_accessed=bytes_accessed),
    )

    out = kernel(U, W0g, b0g, W1g, b1g, W2g, b2g)       # (n_groups, M_pad, G)
    out = jnp.transpose(out, (1, 0, 2)).reshape(M_pad, n_groups * G)
    out = out[:M, :p]                                   # drop row / series padding
    return out.reshape(batch, T_out, p)                 # == torch.cat([...], dim=2)


def reference_forward(X, params, lag):
    """Pure-JAX reference of the PyTorch forward (logvar is None)."""
    W0, b0, W1, b1, W2, b2 = params
    batch, T, p = X.shape
    T_out = T - lag + 1
    idx = jnp.arange(T_out)[:, None] + jnp.arange(lag)[None, :]
    windows = X[:, idx, :]                                             # (b, T_out, lag, p)
    U = jnp.transpose(windows, (0, 1, 3, 2)).reshape(batch, T_out, p * lag)

    cols = []
    for i in range(p):
        h = U @ W0[i].reshape(W0.shape[1], -1).T + b0[i, 0]
        h = jnp.maximum(h, 0.0)
        h = h @ W1[i].T + b1[i, 0]
        h = jnp.maximum(h, 0.0)
        o = h @ W2[i].T + b2[i, 0]                                     # (b, T_out, 1)
        cols.append(o)
    return jnp.concatenate(cols, axis=2)


def init_params(key, p, lag, hidden):
    """Deterministic synthetic parameters (shapes match nn.Conv1d weights)."""
    H0, H1 = hidden
    keys = jax.random.split(key, 6)
    # Conv1d(num_series, H0, lag): weight (H0, p, lag) -> flattened (H0, p*lag)
    W0 = 0.1 * jax.random.normal(keys[0], (p, H0, p * lag), jnp.float32)
    b0 = 0.1 * jax.random.normal(keys[1], (p, 1, H0), jnp.float32)
    # Conv1d(H0, H1, 1): weight (H1, H0, 1) -> (H1, H0)
    W1 = 0.1 * jax.random.normal(keys[2], (p, H1, H0), jnp.float32)
    b1 = 0.1 * jax.random.normal(keys[3], (p, 1, H1), jnp.float32)
    # Conv1d(H1, 1, 1): weight (1, H1, 1) -> (1, H1)
    W2 = 0.1 * jax.random.normal(keys[4], (p, 1, H1), jnp.float32)
    b2 = 0.1 * jax.random.normal(keys[5], (p, 1, 1), jnp.float32)
    return (W0, b0, W1, b1, W2, b2)


if __name__ == "__main__":
    key = jax.random.PRNGKey(0)

    # Case 1: single group (p=4, H=32 -> G=4, G*H=128), single M tile.
    batch, T, p, lag, hidden = 2, 16, 4, 3, [32, 32]
    k_x, k_p, key = jax.random.split(key, 3)
    X = jax.random.normal(k_x, (batch, T, p), jnp.float32)
    params = init_params(k_p, p, lag, hidden)
    fwd = jax.jit(functools.partial(cmlp_forward, lag=lag))
    out = jax.block_until_ready(fwd(X, params))
    ref = reference_forward(X, params, lag)
    assert out.shape == (batch, T - lag + 1, p), out.shape
    assert jnp.allclose(out, ref, atol=1e-4, rtol=1e-4), float(jnp.max(jnp.abs(out - ref)))

    # Case 2: exercises series-group padding (p=6 -> 2 groups of 4) and H0 != H1.
    batch, T, p, lag, hidden = 3, 20, 6, 4, [32, 16]
    k_x, k_p, key = jax.random.split(key, 3)
    X = jax.random.normal(k_x, (batch, T, p), jnp.float32)
    params = init_params(k_p, p, lag, hidden)
    fwd = jax.jit(functools.partial(cmlp_forward, lag=lag))
    out = jax.block_until_ready(fwd(X, params))
    ref = reference_forward(X, params, lag)
    assert out.shape == (batch, T - lag + 1, p), out.shape
    assert jnp.allclose(out, ref, atol=1e-4, rtol=1e-4), float(jnp.max(jnp.abs(out - ref)))

    print("KERNEL_OK")
</pallas_src>

<mosaic_0001>
module attributes {stable_mosaic.version = 11 : i64} {
  func.func @_cmlp_kernel(%arg0: i32, %arg1: i32, %arg2: memref<32x12xf32, #tpu.memory_space<vmem>>, %arg3: memref<1x12x128xf32, #tpu.memory_space<vmem>>, %arg4: memref<1x1x128xf32, #tpu.memory_space<vmem>>, %arg5: memref<1x128x128xf32, #tpu.memory_space<vmem>>, %arg6: memref<1x1x128xf32, #tpu.memory_space<vmem>>, %arg7: memref<1x128x4xf32, #tpu.memory_space<vmem>>, %arg8: memref<1x1x4xf32, #tpu.memory_space<vmem>>, %arg9: memref<1x32x4xf32, #tpu.memory_space<vmem>>) attributes {dimension_semantics = [#tpu.dimension_semantics<parallel>, #tpu.dimension_semantics<parallel>], iteration_bounds = array<i64: 1, 1>, scalar_prefetch = 0 : i64, scratch_operands = 0 : i64, tpu.core_type = #tpu.core_type<tc>, window_params = [{transform_indices = @transform_0, window_bounds = array<i64: 32, 12>}, {transform_indices = @transform_1, window_bounds = array<i64: 1, 12, 128>}, {transform_indices = @transform_2, window_bounds = array<i64: 1, 1, 128>}, {transform_indices = @transform_3, window_bounds = array<i64: 1, 128, 128>}, {transform_indices = @transform_4, window_bounds = array<i64: 1, 1, 128>}, {transform_indices = @transform_5, window_bounds = array<i64: 1, 128, 4>}, {transform_indices = @transform_6, window_bounds = array<i64: 1, 1, 4>}, {transform_indices = @transform_7, window_bounds = array<i64: 1, 32, 4>}]} {
    %c0 = arith.constant 0 : index
    %c0_0 = arith.constant 0 : index
    %0 = vector.load %arg2[%c0, %c0_0] : memref<32x12xf32, #tpu.memory_space<vmem>>, vector<32x12xf32>
    %c0_1 = arith.constant 0 : index
    %c0_2 = arith.constant 0 : index
    %c0_3 = arith.constant 0 : index
    %1 = vector.load %arg3[%c0_1, %c0_2, %c0_3] : memref<1x12x128xf32, #tpu.memory_space<vmem>>, vector<1x12x128xf32>
    %2 = vector.shape_cast %1 : vector<1x12x128xf32> to vector<12x128xf32>
    %cst = arith.constant dense<0.000000e+00> : vector<32x128xf32>
    %3 = tpu.matmul %0, %2, %cst {dimension_numbers = #tpu.dot_dimension_numbers<[1], [0], [0], [1], [0, 0, 1, 1], [], []>} : vector<32x12xf32>, vector<12x128xf32>, vector<32x128xf32> -> vector<32x128xf32>
    %c0_4 = arith.constant 0 : index
    %c0_5 = arith.constant 0 : index
    %c0_6 = arith.constant 0 : index
    %4 = vector.load %arg4[%c0_4, %c0_5, %c0_6] : memref<1x1x128xf32, #tpu.memory_space<vmem>>, vector<1x1x128xf32>
    %5 = vector.shape_cast %4 : vector<1x1x128xf32> to vector<1x128xf32>
    %6 = vector.broadcast %5 : vector<1x128xf32> to vector<32x128xf32>
    %7 = arith.addf %3, %6 : vector<32x128xf32>
    %cst_7 = arith.constant 0.000000e+00 : f32
    %8 = vector.broadcast %cst_7 : f32 to vector<32x128xf32>
    %9 = arith.maximumf %7, %8 : vector<32x128xf32>
    %c0_8 = arith.constant 0 : index
    %c0_9 = arith.constant 0 : index
    %c0_10 = arith.constant 0 : index
    %10 = vector.load %arg5[%c0_8, %c0_9, %c0_10] : memref<1x128x128xf32, #tpu.memory_space<vmem>>, vector<1x128x128xf32>
    %11 = vector.shape_cast %10 : vector<1x128x128xf32> to vector<128x128xf32>
    %cst_11 = arith.constant dense<0.000000e+00> : vector<32x128xf32>
    %12 = tpu.matmul %9, %11, %cst_11 {dimension_numbers = #tpu.dot_dimension_numbers<[1], [0], [0], [1], [0, 0, 1, 1], [], []>} : vector<32x128xf32>, vector<128x128xf32>, vector<32x128xf32> -> vector<32x128xf32>
    %c0_12 = arith.constant 0 : index
    %c0_13 = arith.constant 0 : index
    %c0_14 = arith.constant 0 : index
    %13 = vector.load %arg6[%c0_12, %c0_13, %c0_14] : memref<1x1x128xf32, #tpu.memory_space<vmem>>, vector<1x1x128xf32>
    %14 = vector.shape_cast %13 : vector<1x1x128xf32> to vector<1x128xf32>
    %15 = vector.broadcast %14 : vector<1x128xf32> to vector<32x128xf32>
    %16 = arith.addf %12, %15 : vector<32x128xf32>
    %cst_15 = arith.constant 0.000000e+00 : f32
    %17 = vector.broadcast %cst_15 : f32 to vector<32x128xf32>
    %18 = arith.maximumf %16, %17 : vector<32x128xf32>
    %c0_16 = arith.constant 0 : index
    %c0_17 = arith.constant 0 : index
    %c0_18 = arith.constant 0 : index
    %19 = vector.load %arg7[%c0_16, %c0_17, %c0_18] : memref<1x128x4xf32, #tpu.memory_space<vmem>>, vector<1x128x4xf32>
    %20 = vector.shape_cast %19 : vector<1x128x4xf32> to vector<128x4xf32>
    %cst_19 = arith.constant dense<0.000000e+00> : vector<32x4xf32>
    %21 = tpu.matmul %18, %20, %cst_19 {dimension_numbers = #tpu.dot_dimension_numbers<[1], [0], [0], [1], [0, 0, 1, 1], [], []>} : vector<32x128xf32>, vector<128x4xf32>, vector<32x4xf32> -> vector<32x4xf32>
    %c0_20 = arith.constant 0 : index
    %c0_21 = arith.constant 0 : index
    %c0_22 = arith.constant 0 : index
    %22 = vector.load %arg8[%c0_20, %c0_21, %c0_22] : memref<1x1x4xf32, #tpu.memory_space<vmem>>, vector<1x1x4xf32>
    %23 = vector.shape_cast %22 : vector<1x1x4xf32> to vector<1x4xf32>
    %24 = vector.broadcast %23 : vector<1x4xf32> to vector<32x4xf32>
    %25 = arith.addf %21, %24 : vector<32x4xf32>
    %c0_23 = arith.constant 0 : index
    %c0_24 = arith.constant 0 : index
    %c0_25 = arith.constant 0 : index
    %26 = vector.load %arg9[%c0_23, %c0_24, %c0_25] : memref<1x32x4xf32, #tpu.memory_space<vmem>>, vector<1x32x4xf32>
    %27 = vector.shape_cast %26 : vector<1x32x4xf32> to vector<32x4xf32>
    %28 = vector.shape_cast %25 : vector<32x4xf32> to vector<1x32x4xf32>
    tpu.vector_store %arg9[%c0_23, %c0_24, %c0_25], %28 {strides = array<i32>} : memref<1x32x4xf32, #tpu.memory_space<vmem>>, vector<1x32x4xf32>,
    return
  }
  func.func @transform_0(%arg0: i32, %arg1: i32) -> (i32, i32) {
    %c0_i32 = arith.constant 0 : i32
    %c0_i32_0 = arith.constant 0 : i32
    return %arg0, %c0_i32 : i32, i32
  }
  func.func @transform_1(%arg0: i32, %arg1: i32) -> (i32, i32, i32) {
    %c0_i32 = arith.constant 0 : i32
    %c0_i32_0 = arith.constant 0 : i32
    %c0_i32_1 = arith.constant 0 : i32
    return %arg1, %c0_i32, %c0_i32_0 : i32, i32, i32
  }
  func.func @transform_2(%arg0: i32, %arg1: i32) -> (i32, i32, i32) {
    %c0_i32 = arith.constant 0 : i32
    %c0_i32_0 = arith.constant 0 : i32
    %c0_i32_1 = arith.constant 0 : i32
    return %arg1, %c0_i32, %c0_i32_0 : i32, i32, i32
  }
  func.func @transform_3(%arg0: i32, %arg1: i32) -> (i32, i32, i32) {
    %c0_i32 = arith.constant 0 : i32
    %c0_i32_0 = arith.constant 0 : i32
    %c0_i32_1 = arith.constant 0 : i32
    return %arg1, %c0_i32, %c0_i32_0 : i32, i32, i32
  }
  func.func @transform_4(%arg0: i32, %arg1: i32) -> (i32, i32, i32) {
    %c0_i32 = arith.constant 0 : i32
    %c0_i32_0 = arith.constant 0 : i32
    %c0_i32_1 = arith.constant 0 : i32
    return %arg1, %c0_i32, %c0_i32_0 : i32, i32, i32
  }
  func.func @transform_5(%arg0: i32, %arg1: i32) -> (i32, i32, i32) {
    %c0_i32 = arith.constant 0 : i32
    %c0_i32_0 = arith.constant 0 : i32
    %c0_i32_1 = arith.constant 0 : i32
    return %arg1, %c0_i32, %c0_i32_0 : i32, i32, i32
  }
  func.func @transform_6(%arg0: i32, %arg1: i32) -> (i32, i32, i32) {
    %c0_i32 = arith.constant 0 : i32
    %c0_i32_0 = arith.constant 0 : i32
    %c0_i32_1 = arith.constant 0 : i32
    return %arg1, %c0_i32, %c0_i32_0 : i32, i32, i32
  }
  func.func @transform_7(%arg0: i32, %arg1: i32) -> (i32, i32, i32) {
    %c0_i32 = arith.constant 0 : i32
    %c0_i32_0 = arith.constant 0 : i32
    return %arg1, %arg0, %c0_i32 : i32, i32, i32
  }
}

</mosaic_0001>

<bundles_post_ra>
// kernel: cmlp_forward.1
= control target key start
LH: loop header
LB: loop body
LE: loop exit
PB: predicated region body
PF: predicated region fallthrough
CT: control target
= control target key end

     0   :  { %vm52_vm0 = vcmask 1043456   ;;  %vm39_vm1 = vcmask 97280   ;;  %vm585_vm2 = vmmov 1   ;;  %vm365_vm4 = vcmask 31744   ;;  %s765_s1 = inlined_call_operand.vmem [shape: f32[1,12,128], index: 1, kind: input, shape index: {}]   ;;  %s766_s0 = inlined_call_operand.vmem [shape: f32[32,12], index: 0, kind: input, shape index: {}]   ;;  %s767_s3 = inlined_call_operand.vmem [shape: f32[1,128,128], index: 3, kind: input, shape index: {}]   ;;  %s768_s5 = inlined_call_operand.vmem [shape: f32[1,128,4], index: 5, kind: input, shape index: {}]   ;;  %s769_s2 = inlined_call_operand.vmem [shape: f32[1,1,128], index: 2, kind: input, shape index: {}]   ;;  %s770_s4 = inlined_call_operand.vmem [shape: f32[1,1,128], index: 4, kind: input, shape index: {}]   ;;  %s771_s6 = inlined_call_operand.vmem [shape: f32[1,1,4], index: 6, kind: input, shape index: {}]   ;;  %s772_s7 = inlined_call_operand.vmem [shape: f32[1,32,4], index: 7, kind: output, shape index: {}]  }
   0x1   :  { %v30_v0 = vld [vmem:[%s765_s1] sm:$0xff]  ;;  %v31_v1 = vld [vmem:[%s765_s1 + $0x8] sm:$0xf]  ;;  %vm515_vm3 = vmpackc.low %vm52_vm0, %vm585_vm2 }
   0x2   :  { %v514_v2 = vpack.c.bf16 %v31_v1, %v30_v0  ;;  %v26_v3 = vld [vmem:[%s766_s0] sm:$0xff]  ;;  %v146_v5 = vld [vmem:[%s767_s3 + $0x8] sm:$0xff]  ;;  %v147_v7 = vld [vmem:[%s767_s3 + $0x10] sm:$0xff] }
   0x3   :  { %432 = vmatprep.mubr.msk.f32.mxu0 %vm39_vm1, %v26_v3  ;;  %v145_v4 = vld [vmem:[%s767_s3] sm:$0xff]  ;;  %v148_v8 = vld [vmem:[%s767_s3 + $0x18] sm:$0xff]  ;;  %v27_v9 = vld [vmem:[%s766_s0 + $0x8] sm:$0xff] }
   0x4   :  { %516 = vmatprep.subr.msk.bf16.mxu0 %vm515_vm3, %v514_v2  ;;  %v520_v6 = vpack.c.bf16 %v146_v5, %v145_v4  ;;  %v524_v10 = vpack.c.bf16 %v148_v8, %v147_v7  ;;  %v149_v11 = vld [vmem:[%s767_s3 + $0x20] sm:$0xff]  ;;  %v150_v12 = vld [vmem:[%s767_s3 + $0x28] sm:$0xff]  ;;  %v28_v13 = vld [vmem:[%s766_s0 + $0x10] sm:$0xff] }
   0x5   :  { %519 = vmatpush3.bf16.msk.msra.mxu0 %vm515_vm3, %v514_v2  ;;  %v528_v14 = vpack.c.bf16 %v150_v12, %v149_v11  ;;  %v29_v15 = vld [vmem:[%s766_s0 + $0x18] sm:$0xff]  ;;  %v151_v16 = vld [vmem:[%s767_s3 + $0x30] sm:$0xff]  ;;  %v153_v19 = vld [vmem:[%s767_s3 + $0x40] sm:$0xff] }
   0x6   :  { %521 = vmatprep.subr.bf16.mxu1 %v520_v6  ;;  %v152_v17 = vld [vmem:[%s767_s3 + $0x38] sm:$0xff]  ;;  %v154_v20 = vld [vmem:[%s767_s3 + $0x48] sm:$0xff]  ;;  %v155_v22 = vld [vmem:[%s767_s3 + $0x50] sm:$0xff] }
   0x7   :  { %523 = vmatpush3.bf16.msra.mxu1 %v520_v6  ;;  %v532_v18 = vpack.c.bf16 %v152_v17, %v151_v16  ;;  %v536_v21 = vpack.c.bf16 %v154_v20, %v153_v19  ;;  %v156_v23 = vld [vmem:[%s767_s3 + $0x58] sm:$0xff]  ;;  %v157_v25 = vld [vmem:[%s767_s3 + $0x60] sm:$0xff]  ;;  %v158_v26 = vld [vmem:[%s767_s3 + $0x68] sm:$0xff] }
   0x8   :  { %433 = vmatmul.mubr.msk.f32.vlgmr.msra.gmra.mrb[0].mxu0 %vm39_vm1, %v27_v9  ;;  %525 = vmatprep.subr.bf16.mxu1 %v524_v10  ;;  %v540_v24 = vpack.c.bf16 %v156_v23, %v155_v22  ;;  %v544_v27 = vpack.c.bf16 %v158_v26, %v157_v25  ;;  %v159_v28 = vld [vmem:[%s767_s3 + $0x70] sm:$0xff]  ;;  %v160_v29 = vld [vmem:[%s767_s3 + $0x78] sm:$0xff]  ;;  %v257_v31 = vld [vmem:[%s768_s5] sm:$0xff] }
   0x9   :  { %435 = vmatprep.mubr.msk.f32.mxu0 %vm39_vm1, %v28_v13  ;;  %v548_v30 = vpack.c.bf16 %v160_v29, %v159_v28  ;;  %v258_v32 = vld [vmem:[%s768_s5 + $0x8] sm:$0xff]  ;;  %v259_v33 = vld [vmem:[%s768_s5 + $0x10] sm:$0xff]  ;;  %v260_v35 = vld [vmem:[%s768_s5 + $0x18] sm:$0xff] }
   0xa   :  { %v552_v34 = vpack.c.bf16 %v258_v32, %v257_v31  ;;  %v556_v36 = vpack.c.bf16 %v260_v35, %v259_v33  ;;  %v261_v37 = vld [vmem:[%s768_s5 + $0x20] sm:$0xff]  ;;  %v262_v38 = vld [vmem:[%s768_s5 + $0x28] sm:$0xff]  ;;  %v263_v40 = vld [vmem:[%s768_s5 + $0x30] sm:$0xff] }
   0xb   :  { %527 = vmatpush3.bf16.msra.mxu1 %v524_v10  ;;  %v560_v39 = vpack.c.bf16 %v262_v38, %v261_v37  ;;  %v264_v41 = vld [vmem:[%s768_s5 + $0x38] sm:$0xff]  ;;  %v265_v43 = vld [vmem:[%s768_s5 + $0x40] sm:$0xff]  ;;  %v266_v44 = vld [vmem:[%s768_s5 + $0x48] sm:$0xff] }
   0xc   :  { %436 = vmatmul.mubr.msk.f32.gmra.mrb[2].mxu0 %vm39_vm1, %v29_v15  ;;  %529 = vmatprep.subr.bf16.mxu1 %v528_v14  ;;  %v564_v42 = vpack.c.bf16 %v264_v41, %v263_v40  ;;  %v568_v45 = vpack.c.bf16 %v266_v44, %v265_v43  ;;  %v267_v46 = vld [vmem:[%s768_s5 + $0x50] sm:$0xff]  ;;  %v268_v47 = vld [vmem:[%s768_s5 + $0x58] sm:$0xff]  ;;  %v269_v49 = vld [vmem:[%s768_s5 + $0x60] sm:$0xff] }
   0xd   :  { %553 = vmatprep.subr.bf16.mxu0 %v552_v34  ;;  %v572_v48 = vpack.c.bf16 %v268_v47, %v267_v46  ;;  %v270_v50 = vld [vmem:[%s768_s5 + $0x68] sm:$0xff]  ;;  %v374_v52 = vld [vmem:[%s769_s2] ss:$0 sm:$0xff]  ;;  %v271_v1 = vld [vmem:[%s768_s5 + $0x70] sm:$0xff] }
   0xe   :  { %555 = vmatpush3.bf16.msra.mxu0 %v552_v34  ;;  %v576_v51 = vpack.c.bf16 %v270_v50, %v269_v49  ;;  %v272_v2 = vld [vmem:[%s768_s5 + $0x78] sm:$0xff]  ;;  %v380_v4 = vld [vmem:[%s770_s4] ss:$0 sm:$0xff] }
   0xf   :  { %531 = vmatpush3.bf16.msra.mxu1 %v528_v14  ;;  %557 = vmatprep.subr.bf16.mxu0 %v556_v36  ;;  %v580_v3 = vpack.c.bf16 %v272_v2, %v271_v1  ;;  %v381_v17 = vld [vmem:[%s771_s6] ss:$0 sm:$0xff] }
  0x10   :  { %533 = vmatprep.subr.bf16.mxu1 %v532_v18 }
  0x12   :  { %559 = vmatpush3.bf16.msra.mxu0 %v556_v36 }
  0x13   :  { %535 = vmatpush3.bf16.msra.mxu1 %v532_v18  ;;  %561 = vmatprep.subr.bf16.mxu0 %v560_v39 }
  0x14   :  { %537 = vmatprep.subr.bf16.mxu1 %v536_v21 }
  0x16   :  { %563 = vmatpush3.bf16.msra.mxu0 %v560_v39 }
  0x17   :  { %539 = vmatpush3.bf16.msra.mxu1 %v536_v21  ;;  %565 = vmatprep.subr.bf16.mxu0 %v564_v42 }
  0x18   :  { %541 = vmatprep.subr.bf16.mxu1 %v540_v24 }
  0x1a   :  { %567 = vmatpush3.bf16.msra.mxu0 %v564_v42 }
  0x1b   :  { %543 = vmatpush3.bf16.msra.mxu1 %v540_v24  ;;  %569 = vmatprep.subr.bf16.mxu0 %v568_v45 }
  0x1c   :  { %545 = vmatprep.subr.bf16.mxu1 %v544_v27 }
  0x1e   :  { %571 = vmatpush3.bf16.msra.mxu0 %v568_v45 }
  0x1f   :  { %547 = vmatpush3.bf16.msra.mxu1 %v544_v27  ;;  %573 = vmatprep.subr.bf16.mxu0 %v572_v48 }
  0x20   :  { %549 = vmatprep.subr.bf16.mxu1 %v548_v30 }
  0x22   :  { %575 = vmatpush3.bf16.msra.mxu0 %v572_v48 }
  0x23   :  { %551 = vmatpush3.bf16.msra.mxu1 %v548_v30  ;;  %577 = vmatprep.subr.bf16.mxu0 %v576_v51 }
  0x26   :  { %579 = vmatpush3.bf16.msra.mxu0 %v576_v51 }
  0x27   :  { %581 = vmatprep.subr.bf16.mxu0 %v580_v3 }
  0x2a   :  { %583 = vmatpush3.bf16.msra.mxu0 %v580_v3 }
  0xdb   :  { %v434_v53 = vpop.f32.mrb[0].mxu0 }
  0xdc   :  { %v128_v54 = vadd.f32 %v434_v53, %v374_v52  ;;  %v122_v55 = vpop.f32.mrb[1].mxu0 }
  0xdd   :  { %v123_v56 = vadd.f32 %v374_v52, %v122_v55 }
  0xde   :  { %v142_v59 = vmax.f32 %v128_v54, 0.0 }
  0xdf   :  { %v437_v57 = vpop.f32.mrb[2].mxu0  ;;  %v141_v58 = vmax.f32 %v123_v56, 0.0 }
  0xe0   :  { %v138_v60 = vadd.f32 %v437_v57, %v374_v52  ;;  %v132_v61 = vpop.f32.mrb[3].mxu0 }
  0xe1   :  { %v133_v62 = vadd.f32 %v374_v52, %v132_v61  ;;  %470 = vmatprep.mubr.f32.mxu1 %v141_v58 }
  0xe2   :  { %471 = vmatmul.mubr.f32.vlgmr.msra.gmra.mrb[0].mxu1 %v142_v59  ;;  %v144_v0 = vmax.f32 %v138_v60, 0.0 }
  0xe3   :  { %v143_v63 = vmax.f32 %v133_v62, 0.0 }
  0xe5   :  { %473 = vmatprep.mubr.f32.mxu1 %v143_v63 }
  0xe6   :  { %474 = vmatmul.mubr.f32.gmra.mrb[2].mxu1 %v144_v0 }
 0x1b5   :  { %v472_v5 = vpop.f32.mrb[0].mxu1 }
 0x1b6   :  { %v240_v6 = vadd.f32 %v472_v5, %v380_v4  ;;  %v234_v7 = vpop.f32.mrb[1].mxu1 }
 0x1b7   :  { %v235_v8 = vadd.f32 %v380_v4, %v234_v7 }
 0x1b8   :  { %v254_v11 = vmax.f32 %v240_v6, 0.0 }
 0x1b9   :  { %v253_v9 = vmax.f32 %v235_v8, 0.0  ;;  %v475_v10 = vpop.f32.mrb[2].mxu1 }
 0x1ba   :  { %v250_v12 = vadd.f32 %v475_v10, %v380_v4  ;;  %v244_v13 = vpop.f32.mrb[3].mxu1 }
 0x1bb   :  { %v245_v14 = vadd.f32 %v380_v4, %v244_v13  ;;  %508 = vmatprep.mubr.f32.mxu0 %v253_v9 }
 0x1bc   :  { %509 = vmatmul.mubr.f32.vlgmr.msra.gmra.mrb[4].mxu0 %v254_v11  ;;  %v256_v16 = vmax.f32 %v250_v12, 0.0 }
 0x1bd   :  { %v255_v15 = vmax.f32 %v245_v14, 0.0 }
 0x1bf   :  { %511 = vmatprep.mubr.f32.mxu0 %v255_v15 }
 0x1c0   :  { %512 = vmatmul.mubr.f32.gmra.mrb[6].mxu0 %v256_v16 }
 0x28f   :  { %v510_v18 = vpop.f32.mrb[4].mxu0 }
 0x290   :  { %v352_v19 = vadd.f32 %v510_v18, %v381_v17  ;;  %v346_v20 = vpop.f32.mrb[5].mxu0 }
 0x291   :  { %v347_v21 = vadd.f32 %v381_v17, %v346_v20 }
 0x292   :  { %367 = vst.msk [vmem:[%s772_s7 + $0x8] sm:$0xff] %vm365_vm4, %v352_v19 }
 0x293   :  { %366 = vst.msk [vmem:[%s772_s7] sm:$0xff] %vm365_vm4, %v347_v21  ;;  %v513_v22 = vpop.f32.mrb[6].mxu0 }
 0x294   :  { %v362_v23 = vadd.f32 %v513_v22, %v381_v17  ;;  %v356_v24 = vpop.f32.mrb[7].mxu0 }
 0x295   :  { %v357_v25 = vadd.f32 %v381_v17, %v356_v24 }
 0x296   :  { %369 = vst.msk [vmem:[%s772_s7 + $0x18] sm:$0xff] %vm365_vm4, %v362_v23 }
 0x297   :  { %368 = vst.msk [vmem:[%s772_s7 + $0x10] sm:$0xff] %vm365_vm4, %v357_v25 }

</bundles_post_ra>
